<compile_context>
chip_gen: v6e
topology: v6e:2x2x1
jax: 0.10.0
libtpu: 0.0.40
codegen_flags: <defaults>
</compile_context>

<pallas_src>
import functools

import numpy as np

import jax
import jax.numpy as jnp
from jax.experimental import pallas as pl
from jax.experimental.pallas import tpu as pltpu


def _basic_block_kernel(x_ref, w1_ref, w2_ref, bias_ref, mask_ref, o_ref, *, W):
    # x_ref   : (C, L)    folded images: lane = img_local*H*W + h*W + w  (f32)
    # w1_ref  : (P, C)    bf16, 1x1 conv weight with BN1 scale folded in
    # w2_ref  : (P, 9*C)  bf16, 3x3 conv weight, im2col layout, BN2 scale folded
    # bias_ref: (P, 2)    f32, col 0 = conv1 bias + BN1 shift, col 1 = BN2 shift
    # mask_ref: (9, L)    f32 {0,1} edge masks for the 9 taps (trace-time consts)
    # o_ref   : (P, L)
    x = x_ref[...].astype(jnp.float32)                       # (C, L)
    bias = bias_ref[...]                                     # (P, 2)
    b1 = bias[:, 0:1]                                        # (P, 1)
    t2 = bias[:, 1:2]                                        # (P, 1)

    # conv1 (1x1 + bias) with BN1 folded -> relu : one MXU matmul (bf16 operands)
    h1 = jnp.dot(w1_ref[...], x.astype(jnp.bfloat16),
                 preferred_element_type=jnp.float32)
    h1 = jnp.maximum(h1 + b1, 0.0)                           # (P, L) f32

    # 3x3 / pad=1 conv as im2col: 9 lane rolls (XLU, essentially free) with
    # precomputed edge masks, feeding ONE K=9*C MXU matmul.
    L = h1.shape[1]
    taps = []
    idx = 0
    for dy in (-1, 0, 1):
        for dx in (-1, 0, 1):
            shift = dy * W + dx                              # static
            if shift == 0:
                taps.append(h1)                              # center tap: always valid
            else:
                # tap[l] = h1[l + shift]; out-of-image / cross-image reads are
                # zeroed by the precomputed mask row.
                tap = pltpu.roll(h1, shift=(-shift) % L, axis=1)
                taps.append(tap * mask_ref[idx:idx + 1, :])
            idx += 1
    patch = jnp.concatenate(taps, axis=0).astype(jnp.bfloat16)   # (9*C, L)

    # conv2 (3x3, no bias) + BN2 scale as a single MXU matmul,
    # then BN2 shift + residual + relu in f32.
    out = jnp.dot(w2_ref[...], patch, preferred_element_type=jnp.float32)
    out = out + t2 + x
    o_ref[...] = jnp.maximum(out, 0.0).astype(o_ref.dtype)


def _default_num_blocks(N):
    # One parallel grid step per local TensorCore: v7x has 2 TCs/chip, v5e/v6e
    # have 1 (where grid=(N,) would just be a serial loop paying ~0.35-0.6us
    # of fixed overhead per step).
    try:
        kind = jax.devices()[0].device_kind.lower()
        cores = 2 if "v7" in kind else 1
    except Exception:  # non-TPU / unknown backend: be conservative
        cores = 1
    g = max(1, min(N, cores))
    while N % g != 0:
        g -= 1
    return g


def basic_block(x_nchw, w1_oihw, b1, w2_oihw,
                g1, be1, m1, v1, g2, be2, m2, v2, eps=1e-5, num_blocks=None):
    N, C, H, W = x_nchw.shape
    P = w1_oihw.shape[0]
    assert C == P, "downsample=None requires inplanes == planes"
    HW = H * W

    G = _default_num_blocks(N) if num_blocks is None else num_blocks
    n_per = N // G
    L = n_per * HW
    assert L % 128 == 0, "folded lane count must be a multiple of 128"

    # eval-mode BN -> per-channel scale/shift, folded into the conv weights.
    s1 = g1 / jnp.sqrt(v1 + eps)
    t1 = be1 - m1 * s1
    s2 = g2 / jnp.sqrt(v2 + eps)
    t2 = be2 - m2 * s2

    w1f = (s1[:, None] * w1_oihw[:, :, 0, 0]).astype(jnp.bfloat16)        # (P, C)
    # (O,I,3,3) -> (O,ky,kx,I) -> (P, 9*C) with flat index (ky*3+kx)*C + c,
    # matching the kernel's tap ordering; fold BN2 scale.
    w2f = (s2[:, None] *
           jnp.transpose(w2_oihw, (0, 2, 3, 1)).reshape(P, 9 * C)
           ).astype(jnp.bfloat16)                                         # (P, 9C)
    bias = jnp.stack([s1 * b1 + t1, t2], axis=1)                          # (P, 2) f32

    # Trace-time edge masks: for each folded lane position, is the (row+dy,
    # col+dx) source pixel inside its image?  hw = lane % HW makes the folded
    # batch per-image correct and zeroes cross-image wraparound taps.
    hw = np.arange(L) % HW
    row = hw // W
    col = hw % W
    m = []
    for dy in (-1, 0, 1):
        for dx in (-1, 0, 1):
            m.append(((row + dy >= 0) & (row + dy < H) &
                      (col + dx >= 0) & (col + dx < W)).astype(np.float32))
    masks = jnp.asarray(np.stack(m, axis=0))                              # (9, L)

    # Lane-dense layout: channels on sublanes, n_per images folded onto lanes.
    # (Wrapper-side transpose is layout plumbing on a few-KB array.)
    x3 = (x_nchw.reshape(G, n_per, C, HW)
                 .transpose(0, 2, 1, 3)
                 .reshape(G, C, L))

    kernel = functools.partial(_basic_block_kernel, W=W)
    full = lambda g: (0, 0)
    out3 = pl.pallas_call(
        kernel,
        out_shape=jax.ShapeDtypeStruct((G, P, L), x_nchw.dtype),
        grid=(G,),
        in_specs=[
            pl.BlockSpec((None, C, L), lambda g: (g, 0, 0)),
            pl.BlockSpec((P, C), full),
            pl.BlockSpec((P, 9 * C), full),
            pl.BlockSpec((P, 2), full),
            pl.BlockSpec((9, L), full),
        ],
        out_specs=pl.BlockSpec((None, P, L), lambda g: (g, 0, 0)),
        compiler_params=pltpu.CompilerParams(dimension_semantics=("parallel",)),
    )(x3, w1f, w2f, bias, masks)

    return (out3.reshape(G, P, n_per, HW)
                 .transpose(0, 2, 1, 3)
                 .reshape(N, P, H, W))


def reference(x_nchw, w1_oihw, b1, w2_oihw,
              g1, be1, m1, v1, g2, be2, m2, v2, eps=1e-5):
    # pure-JAX (f32, HIGHEST precision) reference for verification
    hp = jax.lax.Precision.HIGHEST
    s1 = g1 / jnp.sqrt(v1 + eps)
    t1 = be1 - m1 * s1
    s2 = g2 / jnp.sqrt(v2 + eps)
    t2 = be2 - m2 * s2

    h = jnp.einsum('nchw,pc->nphw', x_nchw, w1_oihw[:, :, 0, 0], precision=hp)
    h = h + b1[None, :, None, None]
    h = jnp.maximum(h * s1[None, :, None, None] + t1[None, :, None, None], 0.0)
    h2 = jax.lax.conv_general_dilated(
        h, w2_oihw, (1, 1), ((1, 1), (1, 1)),
        dimension_numbers=('NCHW', 'OIHW', 'NCHW'), precision=hp)
    out = h2 * s2[None, :, None, None] + t2[None, :, None, None] + x_nchw
    return jnp.maximum(out, 0.0)


if __name__ == "__main__":
    key = jax.random.PRNGKey(0)
    ks = jax.random.split(key, 12)

    # BasicBlock(inplanes=8, planes=8, stride=1, downsample=None)
    N, C, H, W = 2, 8, 16, 16
    eps = 1e-5

    x_nchw = jax.random.normal(ks[0], (N, C, H, W), jnp.float32)

    # conv1 = nn.Conv2d(C, C, kernel_size=1)  (OIHW weight, with bias)
    w1_oihw = 0.1 * jax.random.normal(ks[1], (C, C, 1, 1), jnp.float32)
    b1 = 0.1 * jax.random.normal(ks[2], (C,), jnp.float32)
    # conv2 = conv3x3(C, C)  (OIHW weight, no bias)
    w2_oihw = 0.1 * jax.random.normal(ks[3], (C, C, 3, 3), jnp.float32)

    # BatchNorm2d params + running stats (eval-mode semantics)
    g1 = 1.0 + 0.1 * jax.random.normal(ks[4], (C,), jnp.float32)
    be1 = 0.1 * jax.random.normal(ks[5], (C,), jnp.float32)
    m1 = 0.1 * jax.random.normal(ks[6], (C,), jnp.float32)
    v1 = jnp.abs(jax.random.normal(ks[7], (C,), jnp.float32)) + 0.5
    g2 = 1.0 + 0.1 * jax.random.normal(ks[8], (C,), jnp.float32)
    be2 = 0.1 * jax.random.normal(ks[9], (C,), jnp.float32)
    m2 = 0.1 * jax.random.normal(ks[10], (C,), jnp.float32)
    v2 = jnp.abs(jax.random.normal(ks[11], (C,), jnp.float32)) + 0.5
    # TODO(synk): training-mode BatchNorm (batch statistics + running-stat
    # update) is not implemented; eval-mode (running-stats) BN is used instead.

    out_nchw = basic_block(x_nchw, w1_oihw, b1, w2_oihw,
                           g1, be1, m1, v1, g2, be2, m2, v2, eps)
    out_nchw = jax.block_until_ready(out_nchw)

    ref_nchw = reference(x_nchw, w1_oihw, b1, w2_oihw,
                         g1, be1, m1, v1, g2, be2, m2, v2, eps)

    assert out_nchw.shape == (N, C, H, W)
    assert jnp.allclose(out_nchw, ref_nchw, rtol=1e-2, atol=1e-2), \
        "Pallas output does not match JAX reference"

    print("KERNEL_OK")
</pallas_src>

<mosaic_0001>
module attributes {stable_mosaic.version = 11 : i64} {
  func.func @_basic_block_kernel(%arg0: i32, %arg1: memref<1x8x512xf32, #tpu.memory_space<vmem>>, %arg2: memref<8x8xbf16, #tpu.memory_space<vmem>>, %arg3: memref<8x72xbf16, #tpu.memory_space<vmem>>, %arg4: memref<8x2xf32, #tpu.memory_space<vmem>>, %arg5: memref<9x512xf32, #tpu.memory_space<vmem>>, %arg6: memref<1x8x512xf32, #tpu.memory_space<vmem>>) attributes {dimension_semantics = [#tpu.dimension_semantics<parallel>], iteration_bounds = array<i64: 1>, scalar_prefetch = 0 : i64, scratch_operands = 0 : i64, tpu.core_type = #tpu.core_type<tc>, window_params = [{transform_indices = @transform_0, window_bounds = array<i64: 1, 8, 512>}, {pipeline_mode = #tpu.pipeline_mode<synchronous>, transform_indices = @transform_1, window_bounds = array<i64: 8, 8>}, {pipeline_mode = #tpu.pipeline_mode<synchronous>, transform_indices = @transform_2, window_bounds = array<i64: 8, 72>}, {pipeline_mode = #tpu.pipeline_mode<synchronous>, transform_indices = @transform_3, window_bounds = array<i64: 8, 2>}, {pipeline_mode = #tpu.pipeline_mode<synchronous>, transform_indices = @transform_4, window_bounds = array<i64: 9, 512>}, {transform_indices = @transform_5, window_bounds = array<i64: 1, 8, 512>}]} {
    %c0 = arith.constant 0 : index
    %c0_0 = arith.constant 0 : index
    %c0_1 = arith.constant 0 : index
    %0 = vector.load %arg1[%c0, %c0_0, %c0_1] : memref<1x8x512xf32, #tpu.memory_space<vmem>>, vector<1x8x512xf32>
    %1 = vector.shape_cast %0 : vector<1x8x512xf32> to vector<8x512xf32>
    %c0_2 = arith.constant 0 : index
    %c0_3 = arith.constant 0 : index
    %2 = vector.load %arg4[%c0_2, %c0_3] : memref<8x2xf32, #tpu.memory_space<vmem>>, vector<8x2xf32>
    %3 = vector.extract_strided_slice %2 {offsets = [0, 0], sizes = [8, 1], strides = [1, 1]} : vector<8x2xf32> to vector<8x1xf32>
    %4 = vector.extract_strided_slice %2 {offsets = [0, 1], sizes = [8, 1], strides = [1, 1]} : vector<8x2xf32> to vector<8x1xf32>
    %c0_4 = arith.constant 0 : index
    %c0_5 = arith.constant 0 : index
    %5 = vector.load %arg2[%c0_4, %c0_5] : memref<8x8xbf16, #tpu.memory_space<vmem>>, vector<8x8xbf16>
    %6 = arith.truncf %1 : vector<8x512xf32> to vector<8x512xbf16>
    %cst = arith.constant dense<0.000000e+00> : vector<8x512xf32>
    %7 = tpu.matmul %5, %6, %cst {dimension_numbers = #tpu.dot_dimension_numbers<[1], [0], [0], [1], [0, 0, 1, 1], [], []>} : vector<8x8xbf16>, vector<8x512xbf16>, vector<8x512xf32> -> vector<8x512xf32>
    %8 = vector.broadcast %3 : vector<8x1xf32> to vector<8x512xf32>
    %9 = arith.addf %7, %8 : vector<8x512xf32>
    %cst_6 = arith.constant 0.000000e+00 : f32
    %10 = vector.broadcast %cst_6 : f32 to vector<8x512xf32>
    %11 = arith.maximumf %9, %10 : vector<8x512xf32>
    %c17_i32 = arith.constant 17 : i32
    %12 = tpu.dynamic_rotate %11 by %c17_i32 dim 1 : vector<8x512xf32>, i32 -> vector<8x512xf32>
    %c0_7 = arith.constant 0 : index
    %c0_8 = arith.constant 0 : index
    %13 = vector.load %arg5[%c0_7, %c0_8] : memref<9x512xf32, #tpu.memory_space<vmem>>, vector<1x512xf32>
    %14 = vector.broadcast %13 : vector<1x512xf32> to vector<8x512xf32>
    %15 = arith.mulf %12, %14 : vector<8x512xf32>
    %c16_i32 = arith.constant 16 : i32
    %16 = tpu.dynamic_rotate %11 by %c16_i32 dim 1 : vector<8x512xf32>, i32 -> vector<8x512xf32>
    %c1 = arith.constant 1 : index
    %c0_9 = arith.constant 0 : index
    %17 = vector.load %arg5[%c1, %c0_9] : memref<9x512xf32, #tpu.memory_space<vmem>>, vector<1x512xf32>
    %18 = vector.broadcast %17 : vector<1x512xf32> to vector<8x512xf32>
    %19 = arith.mulf %16, %18 : vector<8x512xf32>
    %c15_i32 = arith.constant 15 : i32
    %20 = tpu.dynamic_rotate %11 by %c15_i32 dim 1 : vector<8x512xf32>, i32 -> vector<8x512xf32>
    %c2 = arith.constant 2 : index
    %c0_10 = arith.constant 0 : index
    %21 = vector.load %arg5[%c2, %c0_10] : memref<9x512xf32, #tpu.memory_space<vmem>>, vector<1x512xf32>
    %22 = vector.broadcast %21 : vector<1x512xf32> to vector<8x512xf32>
    %23 = arith.mulf %20, %22 : vector<8x512xf32>
    %c1_i32 = arith.constant 1 : i32
    %24 = tpu.dynamic_rotate %11 by %c1_i32 dim 1 : vector<8x512xf32>, i32 -> vector<8x512xf32>
    %c3 = arith.constant 3 : index
    %c0_11 = arith.constant 0 : index
    %25 = vector.load %arg5[%c3, %c0_11] : memref<9x512xf32, #tpu.memory_space<vmem>>, vector<1x512xf32>
    %26 = vector.broadcast %25 : vector<1x512xf32> to vector<8x512xf32>
    %27 = arith.mulf %24, %26 : vector<8x512xf32>
    %c511_i32 = arith.constant 511 : i32
    %28 = tpu.dynamic_rotate %11 by %c511_i32 dim 1 : vector<8x512xf32>, i32 -> vector<8x512xf32>
    %c5 = arith.constant 5 : index
    %c0_12 = arith.constant 0 : index
    %29 = vector.load %arg5[%c5, %c0_12] : memref<9x512xf32, #tpu.memory_space<vmem>>, vector<1x512xf32>
    %30 = vector.broadcast %29 : vector<1x512xf32> to vector<8x512xf32>
    %31 = arith.mulf %28, %30 : vector<8x512xf32>
    %c497_i32 = arith.constant 497 : i32
    %32 = tpu.dynamic_rotate %11 by %c497_i32 dim 1 : vector<8x512xf32>, i32 -> vector<8x512xf32>
    %c6 = arith.constant 6 : index
    %c0_13 = arith.constant 0 : index
    %33 = vector.load %arg5[%c6, %c0_13] : memref<9x512xf32, #tpu.memory_space<vmem>>, vector<1x512xf32>
    %34 = vector.broadcast %33 : vector<1x512xf32> to vector<8x512xf32>
    %35 = arith.mulf %32, %34 : vector<8x512xf32>
    %c496_i32 = arith.constant 496 : i32
    %36 = tpu.dynamic_rotate %11 by %c496_i32 dim 1 : vector<8x512xf32>, i32 -> vector<8x512xf32>
    %c7 = arith.constant 7 : index
    %c0_14 = arith.constant 0 : index
    %37 = vector.load %arg5[%c7, %c0_14] : memref<9x512xf32, #tpu.memory_space<vmem>>, vector<1x512xf32>
    %38 = vector.broadcast %37 : vector<1x512xf32> to vector<8x512xf32>
    %39 = arith.mulf %36, %38 : vector<8x512xf32>
    %c495_i32 = arith.constant 495 : i32
    %40 = tpu.dynamic_rotate %11 by %c495_i32 dim 1 : vector<8x512xf32>, i32 -> vector<8x512xf32>
    %c8 = arith.constant 8 : index
    %c0_15 = arith.constant 0 : index
    %41 = vector.load %arg5[%c8, %c0_15] : memref<9x512xf32, #tpu.memory_space<vmem>>, vector<1x512xf32>
    %42 = vector.broadcast %41 : vector<1x512xf32> to vector<8x512xf32>
    %43 = arith.mulf %40, %42 : vector<8x512xf32>
    %44 = tpu.concatenate %15, %19, %23, %27, %11, %31, %35, %39, %43 in 0 : vector<8x512xf32>, vector<8x512xf32>, vector<8x512xf32>, vector<8x512xf32>, vector<8x512xf32>, vector<8x512xf32>, vector<8x512xf32>, vector<8x512xf32>, vector<8x512xf32> -> vector<72x512xf32>
    %45 = arith.truncf %44 : vector<72x512xf32> to vector<72x512xbf16>
    %c0_16 = arith.constant 0 : index
    %c0_17 = arith.constant 0 : index
    %46 = vector.load %arg3[%c0_16, %c0_17] : memref<8x72xbf16, #tpu.memory_space<vmem>>, vector<8x72xbf16>
    %cst_18 = arith.constant dense<0.000000e+00> : vector<8x512xf32>
    %47 = tpu.matmul %46, %45, %cst_18 {dimension_numbers = #tpu.dot_dimension_numbers<[1], [0], [0], [1], [0, 0, 1, 1], [], []>} : vector<8x72xbf16>, vector<72x512xbf16>, vector<8x512xf32> -> vector<8x512xf32>
    %48 = vector.broadcast %4 : vector<8x1xf32> to vector<8x512xf32>
    %49 = arith.addf %47, %48 : vector<8x512xf32>
    %50 = arith.addf %49, %1 : vector<8x512xf32>
    %cst_19 = arith.constant 0.000000e+00 : f32
    %51 = vector.broadcast %cst_19 : f32 to vector<8x512xf32>
    %52 = arith.maximumf %50, %51 : vector<8x512xf32>
    %c0_20 = arith.constant 0 : index
    %c0_21 = arith.constant 0 : index
    %c0_22 = arith.constant 0 : index
    %53 = vector.load %arg6[%c0_20, %c0_21, %c0_22] : memref<1x8x512xf32, #tpu.memory_space<vmem>>, vector<1x8x512xf32>
    %54 = vector.shape_cast %53 : vector<1x8x512xf32> to vector<8x512xf32>
    %55 = vector.shape_cast %52 : vector<8x512xf32> to vector<1x8x512xf32>
    tpu.vector_store %arg6[%c0_20, %c0_21, %c0_22], %55 {strides = array<i32>} : memref<1x8x512xf32, #tpu.memory_space<vmem>>, vector<1x8x512xf32>,
    return
  }
  func.func @transform_0(%arg0: i32) -> (i32, i32, i32) {
    %c0_i32 = arith.constant 0 : i32
    %c0_i32_0 = arith.constant 0 : i32
    %c0_i32_1 = arith.constant 0 : i32
    return %arg0, %c0_i32, %c0_i32_0 : i32, i32, i32
  }
  func.func @transform_1(%arg0: i32) -> (i32, i32) {
    %c0_i32 = arith.constant 0 : i32
    %c0_i32_0 = arith.constant 0 : i32
    %c0_i32_1 = arith.constant 0 : i32
    return %c0_i32, %c0_i32_0 : i32, i32
  }
  func.func @transform_2(%arg0: i32) -> (i32, i32) {
    %c0_i32 = arith.constant 0 : i32
    %c0_i32_0 = arith.constant 0 : i32
    %c0_i32_1 = arith.constant 0 : i32
    return %c0_i32, %c0_i32_0 : i32, i32
  }
  func.func @transform_3(%arg0: i32) -> (i32, i32) {
    %c0_i32 = arith.constant 0 : i32
    %c0_i32_0 = arith.constant 0 : i32
    %c0_i32_1 = arith.constant 0 : i32
    return %c0_i32, %c0_i32_0 : i32, i32
  }
  func.func @transform_4(%arg0: i32) -> (i32, i32) {
    %c0_i32 = arith.constant 0 : i32
    %c0_i32_0 = arith.constant 0 : i32
    %c0_i32_1 = arith.constant 0 : i32
    return %c0_i32, %c0_i32_0 : i32, i32
  }
  func.func @transform_5(%arg0: i32) -> (i32, i32, i32) {
    %c0_i32 = arith.constant 0 : i32
    %c0_i32_0 = arith.constant 0 : i32
    %c0_i32_1 = arith.constant 0 : i32
    return %arg0, %c0_i32, %c0_i32_0 : i32, i32, i32
  }
}

</mosaic_0001>

<bundles_post_ra>
// kernel: tpu_custom_call.1
= control target key start
LH: loop header
LB: loop body
LE: loop exit
PB: predicated region body
PF: predicated region fallthrough
CT: control target
= control target key end

     0   :  { %10 = vsyncpa [#allocation3], 0  ;;  %s1087_s0 = inlined_call_operand.hbm [shape: f32[1,8,512], index: 0, kind: input, shape index: {}]   ;;  %s1088_s1 = inlined_call_operand.vmem [shape: bf16[8,8], index: 1, kind: input, shape index: {}]   ;;  %s1089_s2 = inlined_call_operand.vmem [shape: bf16[8,72], index: 2, kind: input, shape index: {}]   ;;  %s1090_s3 = inlined_call_operand.vmem [shape: f32[8,2], index: 3, kind: input, shape index: {}]   ;;  %s1091_s4 = inlined_call_operand.hbm [shape: f32[9,512], index: 4, kind: input, shape index: {}]   ;;  %s1092_s5 = inlined_call_operand.hbm [shape: f32[1,8,512], index: 5, kind: output, shape index: {}]  }
   0x1   :  { %11 = vsyncpa [#allocation6], 0 }
   0x2   :  { %12 = vsyncpa [#allocation4], 0  ;;  %s730_s18 = smov [#allocation2]   ;;  %s731_s20 = smov [#allocation5]  }
   0x3   :  { %s19_s19 = sshll.u32 %s730_s18, 4  ;;  %s34_s21 = sshll.u32 %s731_s20, 4  ;;  %s20_s19 = int_to_ptr.vmem [resolvable:$true] %s19_s19  ;;  %s35_s21 = int_to_ptr.vmem [resolvable:$true] %s34_s21 }
   0x4   :  { %s672_s22 = scalar_lea.vmem %s20_s19, 512  ;;  %p677_p1 = scmp.lt.s32.totalorder %s20_s19, %s20_s19 }
   0x5   :  { %p673_p0 = scmp.ne.s32.totalorder %s20_s19, %s672_s22  ;;  %p678_p2 = scmp.lt.s32.totalorder %s672_s22, %s672_s22 }
   0x7   :  { %p679_p3 = por %p678_p2, %p677_p1 }
   0x9   :  { %p680_p4 = pnand %p679_p3, %p673_p0 }
   0xb   :  { %683 = shalt.err (!%p680_p4)
}
   0xc   :  { %22 = dma.hbm_to_vmem [thread:$0]  %s1087_s0, 512, %s20_s19, [#allocation3]  }
   0xd   :  { %s692_s25 = scalar_lea.vmem %s35_s21, 1024  ;;  %p697_p6 = scmp.lt.s32.totalorder %s35_s21, %s35_s21 }
   0xe   :  { %p693_p5 = scmp.ne.s32.totalorder %s35_s21, %s692_s25  ;;  %p698_p7 = scmp.lt.s32.totalorder %s692_s25, %s692_s25 }
  0x10   :  { %p699_p8 = por %p698_p7, %p697_p6 }
  0x12   :  { %p700_p9 = pnand %p699_p8, %p693_p5 }
  0x14   :  { %703 = shalt.err (!%p700_p9)
}
  0x15   :  { %s732_s26 = smov 512   ;;  %s733_s27 = smov 32  }
  0x16   :  { %40 = dma.hbm_to_vmem [thread:$0]  %s1091_s4, 1024, %s35_s21, [#allocation6], %s732_s26, %s732_s26, %s733_s27  }
  0x17   :  { %724 = dma.done.wait [#allocation3], 512  }
  0x18   :  { %725 = vsyncadd [#allocation3], 4294966784 }
  0x19   :  { %726 = dma.done.wait [#allocation6], 1024  }
  0x1a   :  { %727 = vsyncadd [#allocation6], 4294966272  ;;  %v734_v0 = vmov 0   ;;  %v781_v1 = vld [vmem:[#allocation2 + $0x8] sm:$0xff]  ;;  %vm67_vm0 = vcmask 1043456   ;;  %v783_v2 = vld [vmem:[#allocation2 + $0x18] sm:$0xff]  ;;  %v174_v31 = vlaneseq }
  0x1b   :  { %112 = vmatprep.mubr.bf16.mxu0 %v734_v0  ;;  %153 = vmatprep.mubr.bf16.mxu1 %v734_v0  ;;  %v785_v3 = vld [vmem:[#allocation2] sm:$0xff]  ;;  %v55_v4 = vpack.c.bf16 %v781_v1, %v781_v1  ;;  %v57_v5 = vpack.c.bf16 %v783_v2, %v783_v2  ;;  %v793_v7 = vld [vmem:[#allocation2 + $0x10] sm:$0xff]  ;;  %vm63_vm1 = vcmask 64512   ;;  %s737_s7 = smov 112   ;;  %s738_s8 = smov 127   ;;  %v743_v30 = vmov 1  }
  0x1c   :  { %661 = vset.pattern.permute.xlu0 %v734_v0  ;;  %v54_v6 = vpack.c.bf16 %v785_v3, %v785_v3  ;;  %v798_v8 = vld [vmem:[%s1090_s3] sm:$0xff]  ;;  %v56_v9 = vpack.c.bf16 %v793_v7, %v793_v7  ;;  %s736_s3 = smov 113   ;;  %s739_s9 = smov 15   ;;  %662 = vset.pattern.permute.xlu1 %v743_v30  ;;  %v855_v32 = vshrl.u32 %v174_v31, 7  ;;  %v857_v33 = vand.u32 127, %v174_v31 }
  0x1d   :  { %60 = vperm.xlu0 %661, %v798_v8   ;;  %638 = vmatprep.subr.msk.bf16.mxu0 %vm67_vm0, %v55_v4  ;;  %v53_v12 = vld [vmem:[%s1088_s1] sm:$0xf]  ;;  %s735_s1 = smov 111   ;;  %s740_s10 = smov 1   ;;  %vm512_vm10 = vcmask 588800  }
  0x1e   :  { %640 = vmatprep.subr.msk.bf16.mxu1 %vm67_vm0, %v57_v5  ;;  %v69_v10 = vsel %vm67_vm0, %v54_v6, 0  ;;  %v75_v11 = vsel %vm67_vm0, %v56_v9, 0  ;;  %s741_s11 = smov 17   ;;  %s742_s12 = smov 16   ;;  %v860_v34 = vsub.s32 2, %v855_v32  ;;  %v863_v35 = vsub.s32 3, %v855_v32 }
  0x1f   :  { %95 = vmatpush1.bf16.msra.mxu0 %v69_v10  ;;  %136 = vmatpush1.bf16.msra.mxu1 %v75_v11  ;;  %v865_v36 = vld [vmem:[#allocation5 + $0x20] ss:$8 sm:$0xf]  ;;  %vm455_vm2 = vcmp.lt.s32.totalorder %v857_v33, 111  ;;  %vm375_vm3 = vcmp.lt.s32.totalorder %v857_v33, 113  ;;  %vm415_vm4 = vcmp.lt.s32.totalorder %v857_v33, 112 }
  0x20   :  { %v474_v39 = vrot.slane %v865_v36, %v860_v34  ;;  %v478_v40 = vrot.slane %v865_v36, %v863_v35  ;;  %v892_v54 = vld [vmem:[#allocation5 + $0x6] ss:$8 sm:$0xf]  ;;  %v897_v57 = vld [vmem:[#allocation5 + $0x7] ss:$8 sm:$0xf] }
  0x21   :  { %663 = vset.pattern.permute.xlu0 %v743_v30  ;;  %v394_v58 = vrot.slane %v892_v54, %v860_v34  ;;  %v398_v59 = vrot.slane %v892_v54, %v863_v35  ;;  %v434_v60 = vrot.slane %v897_v57, %v860_v34  ;;  %v438_v61 = vrot.slane %v897_v57, %v863_v35  ;;  %s744_s15 = smov [#allocation7]  }
  0x22   :  { %639 = vmatmul.mubr.msk.bf16.vlgmr.msra.gmra.mxu0 %vm63_vm1, %v53_v12  ;;  %641 = vmatmul.mubr.msk.bf16.vlgmr.msra.gmra.mxu1 %vm63_vm1, %v53_v12  ;;  %vm335_vm5 = vcmp.lt.s32.totalorder %v857_v33, 127  ;;  %vm295_vm6 = vcmp.lt.s32.totalorder %v857_v33, 1  ;;  %vm255_vm7 = vcmp.lt.s32.totalorder %v857_v33, 15  ;;  %vm176_vm8 = vcmp.lt.s32.totalorder %v857_v33, 17 }
  0x23   :  { %560 = vmatprep.mubr.bf16.mxu0 %v734_v0  ;;  %601 = vmatprep.mubr.bf16.mxu1 %v734_v0  ;;  %vm215_vm9 = vcmp.lt.s32.totalorder %v857_v33, 16 }
  0x98   :  { %v61_v13 = vpop.permute.xlu0 %60 }
  0xe2   :  { %v114_v14 = vpop.f32.mrf.mxu0  ;;  %v155_v16 = vpop.f32.mrf.mxu1 }
  0xe3   :  { %v115_v15 = vadd.f32 %v114_v14, %v61_v13  ;;  %v156_v17 = vadd.f32 %v155_v16, %v61_v13  ;;  %v923_v16 = vld [vmem:[#allocation5 + $0x5] ss:$8 sm:$0xf] }
  0xe4   :  { %v116_v18 = vpop.f32.mrf.mxu0  ;;  %v157_v20 = vpop.f32.mrf.mxu1 }
  0xe5   :  { %v810_v19 = vmax.f32 %v115_v15, 0.0  ;;  %v812_v21 = vmax.f32 %v156_v17, 0.0  ;;  %v158_v22 = vadd.f32 %v157_v20, %v61_v13  ;;  %v117_v26 = vadd.f32 %v116_v18, %v61_v13 }
  0xe6   :  { %v118_v23 = vpop.f32.mrf.mxu0  ;;  %v159_v24 = vpop.f32.mrf.mxu1  ;;  %v354_v17 = vrot.slane %v923_v16, %v860_v34  ;;  %v358_v18 = vrot.slane %v923_v16, %v863_v35 }
  0xe7   :  { %447 = vrot.lane.b32.xlu0 %v810_v19, %s735_s1  ;;  %451 = vrot.lane.b32.xlu1 %v812_v21, %s735_s1  ;;  %v818_v27 = vmax.f32 %v158_v22, 0.0  ;;  %v823_v29 = vmax.f32 %v117_v26, 0.0 }
  0xe8   :  { %v119_v25 = vpop.f32.mrf.mxu0  ;;  %v160_v28 = vpop.f32.mrf.mxu1 }
  0xeb   :  { %453 = vrot.lane.b32.xlu0 %v818_v27, %s735_s1  ;;  %367 = vrot.lane.b32.xlu1 %v810_v19, %s736_s3 }
  0xef   :  { %369 = vrot.lane.b32.xlu0 %v823_v29, %s736_s3  ;;  %371 = vrot.lane.b32.xlu1 %v812_v21, %s736_s3 }
  0xf3   :  { %373 = vrot.lane.b32.xlu0 %v818_v27, %s736_s3  ;;  %407 = vrot.lane.b32.xlu1 %v810_v19, %s737_s7 }
  0xf7   :  { %409 = vrot.lane.b32.xlu0 %v823_v29, %s737_s7  ;;  %411 = vrot.lane.b32.xlu1 %v812_v21, %s737_s7 }
  0xfb   :  { %413 = vrot.lane.b32.xlu0 %v818_v27, %s737_s7  ;;  %327 = vrot.lane.b32.xlu1 %v810_v19, %s738_s8 }
  0xff   :  { %329 = vrot.lane.b32.xlu0 %v823_v29, %s738_s8  ;;  %331 = vrot.lane.b32.xlu1 %v812_v21, %s738_s8 }
 0x103   :  { %333 = vrot.lane.b32.xlu0 %v818_v27, %s738_s8  ;;  %247 = vrot.lane.b32.xlu1 %v810_v19, %s739_s9 }
 0x107   :  { %249 = vrot.lane.b32.xlu0 %v823_v29, %s739_s9  ;;  %251 = vrot.lane.b32.xlu1 %v812_v21, %s739_s9 }
 0x10b   :  { %253 = vrot.lane.b32.xlu0 %v818_v27, %s739_s9  ;;  %287 = vrot.lane.b32.xlu1 %v810_v19, %s740_s10 }
 0x10f   :  { %289 = vrot.lane.b32.xlu0 %v823_v29, %s740_s10  ;;  %291 = vrot.lane.b32.xlu1 %v812_v21, %s740_s10 }
 0x113   :  { %293 = vrot.lane.b32.xlu0 %v818_v27, %s740_s10  ;;  %449 = vrot.lane.b32.xlu1 %v823_v29, %s735_s1 }
 0x117   :  { %168 = vrot.lane.b32.xlu0 %v823_v29, %s741_s11  ;;  %166 = vrot.lane.b32.xlu1 %v810_v19, %s741_s11 }
 0x11b   :  { %172 = vrot.lane.b32.xlu0 %v818_v27, %s741_s11  ;;  %170 = vrot.lane.b32.xlu1 %v812_v21, %s741_s11 }
 0x11f   :  { %209 = vrot.lane.b32.xlu0 %v823_v29, %s742_s12  ;;  %207 = vrot.lane.b32.xlu1 %v810_v19, %s742_s12 }
 0x123   :  { %213 = vrot.lane.b32.xlu0 %v818_v27, %s742_s12  ;;  %211 = vrot.lane.b32.xlu1 %v812_v21, %s742_s12 }
 0x127   :  { %509 = vperm.xlu1 %662, %v798_v8  }
 0x159   :  { %v867_v37 = vpop.permute.xlu0 %447  ;;  %v869_v38 = vpop.permute.xlu1 %451 }
 0x15d   :  { %v454_v41 = vpop.permute.xlu0 %453  ;;  %v876_v42 = vpop.permute.xlu1 %367 }
 0x15e   :  { %v456_v43 = vsel %vm455_vm2, %v869_v38, %v454_v41  ;;  %v459_v44 = vsel %vm455_vm2, %v454_v41, %v867_v37  ;;  %v944_v41 = vsub.s32 1, %v855_v32 }
 0x15f   :  { %v485_v45 = vmul.f32 %v474_v39, %v456_v43  ;;  %v486_v46 = vmul.f32 %v478_v40, %v459_v44  ;;  %v948_v44 = vld [vmem:[#allocation5 + $0x3] ss:$8 sm:$0xf] }
 0x161   :  { %v505_v47 = vpack.c.bf16 %v485_v45, %v485_v45  ;;  %v506_v48 = vpack.c.bf16 %v486_v46, %v486_v46  ;;  %v884_v49 = vpop.permute.xlu0 %369  ;;  %v886_v50 = vpop.permute.xlu1 %371  ;;  %v951_v45 = vld [vmem:[#allocation5 + $0x2] ss:$8 sm:$0xf]  ;;  %v954_v46 = vsub.s32 0, %v855_v32  ;;  %v318_v32 = vrot.slane %v948_v44, %v863_v35 }
 0x163   :  { %644 = vmatprep.subr.msk.bf16.mxu1 %vm67_vm0, %v506_v48  ;;  %v523_v51 = vsel %vm67_vm0, %v505_v47, 0  ;;  %v314_v48 = vrot.slane %v948_v44, %v860_v34 }
 0x164   :  { %576 = vmatpush1.bf16.msra.mxu1 %v523_v51  ;;  %v430_v51 = vrot.slane %v897_v57, %v944_v41 }
 0x165   :  { %v374_v52 = vpop.permute.xlu0 %373  ;;  %v890_v53 = vpop.permute.xlu1 %407 }
 0x166   :  { %v376_v62 = vsel %vm375_vm3, %v886_v50, %v374_v52  ;;  %v379_v63 = vsel %vm375_vm3, %v374_v52, %v876_v42  ;;  %v278_v52 = vrot.slane %v951_v45, %v863_v35 }
 0x167   :  { %v405_v8 = vmul.f32 %v394_v58, %v376_v62  ;;  %v406_v9 = vmul.f32 %v398_v59, %v379_v63  ;;  %v274_v59 = vrot.slane %v951_v45, %v860_v34  ;;  %v470_v62 = vrot.slane %v865_v36, %v944_v41 }
 0x168   :  { %v426_v63 = vrot.slane %v897_v57, %v954_v46 }
 0x169   :  { %v894_v55 = vpop.permute.xlu0 %409  ;;  %v412_v56 = vpop.permute.xlu1 %411 }
 0x16a   :  { %v418_v57 = vsel %vm415_vm4, %v890_v53, %v894_v55 }
 0x16d   :  { %v414_v0 = vpop.permute.xlu0 %413  ;;  %v914_v4 = vpop.permute.xlu1 %327 }
 0x16e   :  { %v416_v5 = vsel %vm415_vm4, %v412_v56, %v414_v0  ;;  %v419_v6 = vsel %vm415_vm4, %v414_v0, %v890_v53  ;;  %v417_v0 = vsel %vm415_vm4, %v894_v55, %v412_v56  ;;  %v386_v53 = vrot.slane %v892_v54, %v954_v46 }
 0x16f   :  { %v445_v10 = vmul.f32 %v434_v60, %v416_v5  ;;  %v446_v11 = vmul.f32 %v438_v61, %v419_v6  ;;  %v466_v61 = vrot.slane %v865_v36, %v954_v46  ;;  %v350_v5 = vrot.slane %v923_v16, %v944_v41 }
 0x170   :  { %v377_v36 = vsel %vm375_vm3, %v884_v49, %v886_v50  ;;  %v378_v55 = vsel %vm375_vm3, %v876_v42, %v884_v49 }
 0x171   :  { %v501_v12 = vpack.c.bf16 %v445_v10, %v405_v8  ;;  %v921_v13 = vpop.permute.xlu0 %329  ;;  %v502_v14 = vpack.c.bf16 %v446_v11, %v406_v9  ;;  %v332_v15 = vpop.permute.xlu1 %331 }
 0x172   :  { %v338_v42 = vsel %vm335_vm5, %v914_v4, %v921_v13 }
 0x173   :  { %577 = vmatprep.subr.bf16.mxu1 %v502_v14 }
 0x174   :  { %578 = vmatpush1.bf16.msra.mxu1 %v501_v12 }
 0x175   :  { %v334_v20 = vpop.permute.xlu0 %333  ;;  %v930_v22 = vpop.permute.xlu1 %247 }
 0x176   :  { %v336_v23 = vsel %vm335_vm5, %v332_v15, %v334_v20  ;;  %v339_v24 = vsel %vm335_vm5, %v334_v20, %v914_v4 }
 0x177   :  { %v365_v25 = vmul.f32 %v354_v17, %v336_v23  ;;  %v366_v26 = vmul.f32 %v358_v18, %v339_v24  ;;  %v444_v17 = vmul.f32 %v430_v51, %v417_v0  ;;  %v1017_v51 = vld [vmem:[#allocation5] ss:$8 sm:$0xf] }
 0x179   :  { %v497_v28 = vpack.c.bf16 %v365_v25, %v812_v21  ;;  %v938_v30 = vpop.permute.xlu0 %249  ;;  %v498_v31 = vpack.c.bf16 %v366_v26, %v818_v27  ;;  %v252_v39 = vpop.permute.xlu1 %251  ;;  %v390_v27 = vrot.slane %v892_v54, %v944_v41  ;;  %v346_v54 = vrot.slane %v923_v16, %v954_v46 }
 0x17a   :  { %v257_v6 = vsel %vm255_vm7, %v938_v30, %v252_v39  ;;  %v270_v16 = vrot.slane %v951_v45, %v944_v41 }
 0x17b   :  { %579 = vmatprep.subr.bf16.mxu1 %v498_v31  ;;  %v285_v18 = vmul.f32 %v274_v59, %v257_v6  ;;  %v306_v59 = vrot.slane %v948_v44, %v954_v46 }
 0x17c   :  { %580 = vmatpush1.bf16.msra.mxu1 %v497_v28 }
 0x17d   :  { %v941_v40 = vpop.permute.xlu0 %253  ;;  %v946_v43 = vpop.permute.xlu1 %287 }
 0x17e   :  { %v256_v60 = vsel %vm255_vm7, %v252_v39, %v941_v40 }
 0x17f   :  { %v286_v11 = vmul.f32 %v278_v52, %v256_v60  ;;  %v403_v52 = vmul.f32 %v386_v53, %v378_v55  ;;  %v190_v60 = vrot.slane %v1017_v51, %v944_v41 }
 0x181   :  { %v290_v21 = vpop.permute.xlu0 %289  ;;  %v292_v47 = vpop.permute.xlu1 %291 }
 0x182   :  { %v297_v58 = vsel %vm295_vm6, %v290_v21, %v292_v47 }
 0x183   :  { %v325_v9 = vmul.f32 %v314_v48, %v297_v58  ;;  %v310_v48 = vrot.slane %v948_v44, %v944_v41  ;;  %v266_v58 = vrot.slane %v951_v45, %v954_v46 }
 0x185   :  { %v294_v8 = vpop.permute.xlu0 %293  ;;  %v450_v56 = vpop.permute.xlu1 %449  ;;  %v493_v26 = vpack.c.bf16 %v325_v9, %v285_v18 }
 0x186   :  { %v296_v10 = vsel %vm295_vm6, %v292_v47, %v294_v8  ;;  %v457_v12 = vsel %vm455_vm2, %v450_v56, %v869_v38  ;;  %v458_v14 = vsel %vm455_vm2, %v867_v37, %v450_v56  ;;  %v337_v38 = vsel %vm335_vm5, %v921_v13, %v332_v15  ;;  %v221_v13 = vld [vmem:[#allocation5 + $0x1] ss:$8 sm:$0xf] }
 0x187   :  { %v326_v50 = vmul.f32 %v318_v32, %v296_v10  ;;  %v483_v20 = vmul.f32 %v466_v61, %v458_v14  ;;  %v484_v23 = vmul.f32 %v470_v62, %v457_v12  ;;  %v404_v37 = vmul.f32 %v390_v27, %v377_v36 }
 0x188   :  { %v443_v47 = vmul.f32 %v426_v63, %v418_v57  ;;  %v364_v49 = vmul.f32 %v350_v5, %v337_v38  ;;  %v298_v32 = vsel %vm295_vm6, %v946_v43, %v290_v21  ;;  %v194_v61 = vrot.slane %v1017_v51, %v860_v34 }
 0x189   :  { %v169_v24 = vpop.permute.xlu0 %168  ;;  %v494_v25 = vpack.c.bf16 %v326_v50, %v286_v11  ;;  %v503_v28 = vpack.c.bf16 %v483_v20, %v483_v20  ;;  %v504_v31 = vpack.c.bf16 %v484_v23, %v484_v23  ;;  %v167_v39 = vpop.permute.xlu1 %166  ;;  %v500_v27 = vpack.c.bf16 %v444_v17, %v404_v37 }
 0x18a   :  { %v499_v45 = vpack.c.bf16 %v443_v47, %v403_v52  ;;  %v363_v63 = vmul.f32 %v346_v54, %v338_v42  ;;  %v258_v21 = vsel %vm255_vm7, %v930_v22, %v938_v30  ;;  %v299_v44 = vsel %vm295_vm6, %v294_v8, %v946_v43 }
 0x18b   :  { %581 = vmatprep.subr.bf16.mxu1 %v494_v25  ;;  %642 = vmatprep.subr.msk.bf16.mxu0 %vm67_vm0, %v504_v31  ;;  %v517_v15 = vsel %vm67_vm0, %v503_v28, 0  ;;  %v324_v0 = vmul.f32 %v310_v48, %v298_v32  ;;  %v496_v5 = vpack.c.bf16 %v364_v49, %v823_v29  ;;  %v230_v6 = vrot.slane %v221_v13, %v944_v41  ;;  %v507_v48 = vld [vmem:[%s1089_s2] sm:$0xf]  ;;  %s628_s2 = sshll.u32 %s744_s15, 4  ;;  %s629_s2 = int_to_ptr.vmem [resolvable:$true] %s628_s2 }
 0x18c   :  { %582 = vmatpush1.bf16.msra.mxu1 %v493_v26  ;;  %535 = vmatpush1.bf16.msra.mxu0 %v517_v15  ;;  %v259_v36 = vsel %vm255_vm7, %v941_v40, %v930_v22  ;;  %v186_v57 = vrot.slane %v1017_v51, %v954_v46  ;;  %v198_v30 = vrot.slane %v1017_v51, %v863_v35  ;;  %s704_s16 = scalar_lea.vmem %s629_s2, 512  ;;  %p709_p11 = scmp.lt.s32.totalorder %s629_s2, %s629_s2 }
 0x18d   :  { %v173_v4 = vpop.permute.xlu0 %172  ;;  %v171_v62 = vpop.permute.xlu1 %170  ;;  %536 = vmatprep.subr.bf16.mxu0 %v500_v27  ;;  %v234_v8 = vrot.slane %v221_v13, %v860_v34  ;;  %v284_v29 = vmul.f32 %v270_v16, %v258_v21  ;;  %v323_v9 = vmul.f32 %v306_v59, %v299_v44  ;;  %v226_v41 = vrot.slane %v221_v13, %v954_v46  ;;  %p705_p10 = scmp.ne.s32.totalorder %s629_s2, %s704_s16  ;;  %p710_p12 = scmp.lt.s32.totalorder %s704_s16, %s704_s16 }
 0x18e   :  { %v238_v10 = vrot.slane %v221_v13, %v863_v35  ;;  %v495_v22 = vpack.c.bf16 %v363_v63, %v810_v19  ;;  %v179_v40 = vsel %vm176_vm8, %v167_v39, %v169_v24  ;;  %v180_v11 = vsel %vm176_vm8, %v173_v4, %v167_v39 }
 0x18f   :  { %v283_v34 = vmul.f32 %v266_v58, %v259_v36  ;;  %v178_v14 = vsel %vm176_vm8, %v169_v24, %v171_v62  ;;  %v492_v17 = vpack.c.bf16 %v324_v0, %v284_v29  ;;  %v177_v35 = vsel %vm176_vm8, %v171_v62, %v173_v4  ;;  %p711_p13 = por %p710_p12, %p709_p11 }
 0x190   :  { %537 = vmatpush1.bf16.msra.mxu0 %v499_v45  ;;  %v204_v18 = vmul.f32 %v190_v60, %v179_v40  ;;  %v203_v20 = vmul.f32 %v186_v57, %v180_v11  ;;  %v205_v55 = vmul.f32 %v194_v61, %v178_v14  ;;  %v206_v37 = vmul.f32 %v198_v30, %v177_v35 }
 0x191   :  { %v210_v43 = vpop.permute.xlu0 %209  ;;  %v208_v56 = vpop.permute.xlu1 %207  ;;  %538 = vmatprep.subr.bf16.mxu0 %v496_v5  ;;  %v491_v46 = vpack.c.bf16 %v323_v9, %v283_v34  ;;  %p712_p0 = pnand %p711_p13, %p705_p10 }
 0x192   :  { %v218_v12 = vsel %vm215_vm9, %v208_v56, %v210_v43 }
 0x193   :  { %v244_v50 = vmul.f32 %v230_v6, %v218_v12 }
 0x194   :  { %539 = vmatpush1.bf16.msra.mxu0 %v495_v22 }
 0x195   :  { %v214_v19 = vpop.permute.xlu0 %213  ;;  %v212_v23 = vpop.permute.xlu1 %211  ;;  %540 = vmatprep.subr.bf16.mxu0 %v492_v17  ;;  %v488_v31 = vpack.c.bf16 %v244_v50, %v204_v18 }
 0x196   :  { %v219_v53 = vsel %vm215_vm9, %v214_v19, %v208_v56  ;;  %v217_v38 = vsel %vm215_vm9, %v210_v43, %v212_v23  ;;  %v216_v24 = vsel %vm215_vm9, %v212_v23, %v214_v19 }
 0x197   :  { %v243_v25 = vmul.f32 %v226_v41, %v219_v53  ;;  %v245_v26 = vmul.f32 %v234_v8, %v217_v38  ;;  %v246_v28 = vmul.f32 %v238_v10, %v216_v24 }
 0x198   :  { %541 = vmatpush1.bf16.msra.mxu0 %v491_v46 }
 0x199   :  { %v487_v39 = vpack.c.bf16 %v243_v25, %v203_v20  ;;  %v489_v47 = vpack.c.bf16 %v245_v26, %v205_v55  ;;  %542 = vmatprep.subr.bf16.mxu0 %v488_v31  ;;  %v490_v54 = vpack.c.bf16 %v246_v28, %v206_v37 }
 0x19b   :  { %583 = vmatprep.subr.bf16.mxu1 %v490_v54 }
 0x19c   :  { %543 = vmatpush1.bf16.msra.mxu0 %v487_v39  ;;  %584 = vmatpush1.bf16.msra.mxu1 %v489_v47 }
 0x19f   :  { %643 = vmatmul.mubr.msk.bf16.vlgmr.msra.gmra.mxu0 %vm512_vm10, %v507_v48  ;;  %645 = vmatmul.mubr.msk.bf16.vlgmr.msra.gmra.mxu1 %vm512_vm10, %v507_v48 }
 0x1a2   :  { %v510_v33 = vpop.permute.xlu1 %509 }
 0x25f   :  { %v562_v51 = vpop.f32.mrf.mxu0  ;;  %v603_v42 = vpop.f32.mrf.mxu1 }
 0x260   :  { %v563_v49 = vadd.f32 %v562_v51, %v510_v33  ;;  %v604_v15 = vadd.f32 %v603_v42, %v510_v33 }
 0x261   :  { %v564_v27 = vpop.f32.mrf.mxu0  ;;  %v605_v52 = vpop.f32.mrf.mxu1 }
 0x262   :  { %v610_v16 = vadd.f32 %v563_v49, %v785_v3  ;;  %v612_v58 = vadd.f32 %v604_v15, %v793_v7  ;;  %v565_v32 = vadd.f32 %v564_v27, %v510_v33  ;;  %v606_v4 = vadd.f32 %v605_v52, %v510_v33 }
 0x263   :  { %v566_v13 = vpop.f32.mrf.mxu0  ;;  %v607_v59 = vpop.f32.mrf.mxu1 }
 0x264   :  { %v614_v60 = vmax.f32 %v610_v16, 0.0  ;;  %v616_v61 = vmax.f32 %v612_v58, 0.0  ;;  %v611_v62 = vadd.f32 %v565_v32, %v781_v1  ;;  %v613_v45 = vadd.f32 %v606_v4, %v783_v2 }
 0x265   :  { %v567_v63 = vpop.f32.mrf.mxu0  ;;  %v608_v21 = vpop.f32.mrf.mxu1 }
 0x266   :  { %618 = vst [vmem:[#allocation7] sm:$0xff] %v614_v60  ;;  %620 = vst [vmem:[#allocation7 + $0x10] sm:$0xff] %v616_v61  ;;  %v615_v44 = vmax.f32 %v611_v62, 0.0  ;;  %v617_v3 = vmax.f32 %v613_v45, 0.0 }
 0x268   :  { %619 = vst [vmem:[#allocation7 + $0x8] sm:$0xff] %v615_v44  ;;  %621 = vst [vmem:[#allocation7 + $0x18] sm:$0xff] %v617_v3 }
 0x269   :  { %715 = shalt.err (!%p712_p0)
}
 0x26a   :  { %631 = dma.vmem_to_hbm [thread:$0]  %s629_s2, 512, %s1092_s5, [#allocation4]  }
 0x26b   :  { %728 = dma.done.wait [#allocation4], 512  }
 0x26c   :  { %729 = vsyncadd [#allocation4], 4294966784 }
 0x26d   :  { %635 = vsyncpa [#allocation3], 1 }
 0x26e   :  { %636 = vsyncpa [#allocation6], 1 }
 0x26f   :  { %637 = vsyncpa [#allocation4], 1 }

</bundles_post_ra>
